<compile_context>
chip_gen: v7x
topology: tpu7x:2x2x1
jax: 0.10.0
libtpu: 0.0.40
codegen_flags: <defaults>
</compile_context>

<pallas_src>
import functools

import jax
import jax.numpy as jnp
from jax.experimental import pallas as pl
from jax.experimental.pallas import tpu as pltpu


def _round_up(n, m):
    return ((n + m - 1) // m) * m


def _cdiv(a, b):
    return -(-a // b)


# ---------------------------------------------------------------------------
# Kernel
# ---------------------------------------------------------------------------
def _hawkes_cell_kernel(x_ref, h_ref, c_ref, ctgt_ref, wx_ref, wh_ref, b_ref,
                        ci_ref, cto_ref, out_ref, dec_ref, *, hp, inv_beta):
    """One batch tile.

       x_ref    (TB, In)     f32   input features
       h_ref    (TB, H)      f32   hidden state
       c_ref    (TB, H)      f32   cell state
       ctgt_ref (TB, H)      f32   target cell state
       wx_ref   (In, 7*Hp)   bf16  gate-padded input weights  (beta folded)
       wh_ref   (H,  7*Hp)   bf16  gate-padded hidden weights (beta folded)
       b_ref    (1,  7*Hp)   f32   gate-padded bias           (beta folded)
       ci_ref / cto_ref / out_ref / dec_ref : (TB, H) f32 outputs
    """
    H = c_ref.shape[-1]

    # Fused pre-activations for all 7 gates: two accumulating MXU matmuls
    # (bf16 operands, f32 accumulation) + one f32 bias add.  Each gate's
    # columns start on a 128-lane boundary (Hp padding) -> zero-cost slices.
    pre = jnp.dot(x_ref[...].astype(jnp.bfloat16), wx_ref[...],
                  preferred_element_type=jnp.float32)
    pre = pre + jnp.dot(h_ref[...].astype(jnp.bfloat16), wh_ref[...],
                        preferred_element_type=jnp.float32)
    pre = pre + b_ref[...]

    def gate(g):
        return pre[:, g * hp:g * hp + H]

    def sigmoid(z):
        # 1 EUP op (tanh) instead of exp + reciprocal.
        return 0.5 * jnp.tanh(0.5 * z) + 0.5

    inpt = sigmoid(gate(0))
    forget = sigmoid(gate(1))
    output = sigmoid(gate(2))
    input_target = sigmoid(gate(3))
    forget_target = sigmoid(gate(4))
    z_i = jnp.tanh(gate(5))

    # Softplus(beta): beta is already folded into the decay gate's W/b columns,
    # so gate(6) == beta * (W_d v + b_d).  Numerically-stable form; multiply by
    # the precomputed 1/beta instead of dividing.
    bx = gate(6)
    decay = (jnp.maximum(bx, 0.0) + jnp.log1p(jnp.exp(-jnp.abs(bx)))) * inv_beta

    ci_ref[...] = forget * c_ref[...] + inpt * z_i
    cto_ref[...] = forget_target * ctgt_ref[...] + input_target * z_i
    out_ref[...] = output
    dec_ref[...] = decay


# ---------------------------------------------------------------------------
# One-time parameter packing (call at parameter-load time, NOT per step)
# ---------------------------------------------------------------------------
def pack_params(W, b, input_dim, hidden_size, *, softrelu_scale):
    """Pack fused (D, 7H) weights / (7H,) bias into the kernel layout.

    W is split into input / hidden halves, every gate is padded to a 128-lane
    block (Hp = round_up(H, 128)) so gate slices are lane-aligned, and the
    Softplus beta is folded into the decay gate's columns.  Weights -> bf16
    (MXU operands), bias -> f32.  Gate order: (input_g, forget_g, output_g,
    input_target, forget_target, z_gate, decay)."""
    H = hidden_size
    Hp = _round_up(max(H, 128), 128)
    beta = float(softrelu_scale)

    Wx = jnp.zeros((input_dim, 7 * Hp), jnp.float32)
    Wh = jnp.zeros((H, 7 * Hp), jnp.float32)
    bp = jnp.zeros((1, 7 * Hp), jnp.float32)
    for g in range(7):
        scale = beta if g == 6 else 1.0   # fold Softplus(beta) into decay gate
        Wx = Wx.at[:, g * Hp:g * Hp + H].set(
            W[:input_dim, g * H:(g + 1) * H] * scale)
        Wh = Wh.at[:, g * Hp:g * Hp + H].set(
            W[input_dim:, g * H:(g + 1) * H] * scale)
        bp = bp.at[0, g * Hp:g * Hp + H].set(b[g * H:(g + 1) * H] * scale)
    return Wx.astype(jnp.bfloat16), Wh.astype(jnp.bfloat16), bp


def _vmem_limit_bytes(tb, input_dim, h, hp):
    weights = (input_dim + h) * 7 * hp * 2 + 7 * hp * 4   # bf16 W_x/W_h + f32 b
    tile_in = tb * (input_dim + 3 * h) * 4                # x, h, c, c_target
    tile_out = 4 * tb * h * 4                             # four f32 outputs
    scratch = 2 * tb * 7 * hp * 4                         # pre slab + act temps
    # 2x weights: constant-index blocks still reserve two buffers (capacity
    # only); 2x tiles: double-buffered streamed blocks.  Plus 2x headroom.
    need = 2 * weights + 2 * (tile_in + tile_out) + scratch
    return int(min(max(2 * need, 32 << 20), 64 << 20))


# ---------------------------------------------------------------------------
# Wrapper
# ---------------------------------------------------------------------------
def hawkes_lstm_cell(x, h_t, c_t, c_target, packed_params, *,
                     softrelu_scale=5.0, batch_tile=None):
    """Fused HawkesLSTMCell forward.

    Returns (c_i, c_target_new, output, decay), each (B, H) float32.
    `packed_params` = pack_params(...) output (packed once at load time)."""
    Wx, Wh, bp = packed_params
    B, input_dim = x.shape
    H = h_t.shape[1]
    Hp = bp.shape[1] // 7
    inv_beta = 1.0 / float(softrelu_scale)

    if batch_tile is None:
        # Keep the per-tile working set inside v7x's 64 MiB VMEM for large H.
        batch_tile = 128 if Hp >= 1024 else 256

    kernel = functools.partial(_hawkes_cell_kernel, hp=Hp, inv_beta=inv_beta)

    if B < 16:
        # Tiny batch: gridless single block (no pipeline / buffering overhead,
        # single TensorCore is fine at this size).  Pad ragged batches up to 8
        # MXU rows; padded rows are zero -> finite garbage, stripped below
        # (keep that invariant if the output handling ever changes).
        Bp = max(8, _round_up(B, 8))
        if Bp != B:
            pad = ((0, Bp - B), (0, 0))
            x, h_t, c_t, c_target = (jnp.pad(a, pad)
                                     for a in (x, h_t, c_t, c_target))
        vmem = pl.BlockSpec(memory_space=pltpu.MemorySpace.VMEM)
        outs = pl.pallas_call(
            kernel,
            out_shape=tuple(jax.ShapeDtypeStruct((Bp, H), jnp.float32)
                            for _ in range(4)),
            in_specs=[vmem] * 7,
            out_specs=(vmem,) * 4,
            compiler_params=pltpu.CompilerParams(
                vmem_limit_bytes=_vmem_limit_bytes(Bp, input_dim, H, Hp)),
        )(x, h_t, c_t, c_target, Wx, Wh, bp)
        if Bp != B:
            outs = tuple(o[:B] for o in outs)
        return tuple(outs)

    # Batch-tiled "parallel" grid: >= 2 balanced tiles so both v7x TensorCores
    # get work; the partial last block (when B % TB != 0) is handled by masked
    # edge DMAs, so no padded-row compute is wasted.
    num_tiles = max(2, _cdiv(B, batch_tile))
    TB = _round_up(_cdiv(B, num_tiles), 8)

    row_spec_x = pl.BlockSpec((TB, input_dim), lambda i: (i, 0))
    row_spec_h = pl.BlockSpec((TB, H), lambda i: (i, 0))
    # Constant index_map -> fetched once, VMEM-resident across grid steps.
    w_x_spec = pl.BlockSpec((input_dim, 7 * Hp), lambda i: (0, 0))
    w_h_spec = pl.BlockSpec((H, 7 * Hp), lambda i: (0, 0))
    b_spec = pl.BlockSpec((1, 7 * Hp), lambda i: (0, 0))

    outs = pl.pallas_call(
        kernel,
        out_shape=tuple(jax.ShapeDtypeStruct((B, H), jnp.float32)
                        for _ in range(4)),
        grid=(num_tiles,),
        in_specs=[row_spec_x, row_spec_h, row_spec_h, row_spec_h,
                  w_x_spec, w_h_spec, b_spec],
        out_specs=tuple(pl.BlockSpec((TB, H), lambda i: (i, 0))
                        for _ in range(4)),
        compiler_params=pltpu.CompilerParams(
            dimension_semantics=("parallel",),
            vmem_limit_bytes=_vmem_limit_bytes(TB, input_dim, H, Hp)),
    )(x, h_t, c_t, c_target, Wx, Wh, bp)
    return tuple(outs)


# ---------------------------------------------------------------------------
# Pure-JAX reference (mirrors the PyTorch forward)
# ---------------------------------------------------------------------------
def _reference(x, h_t, c_t, c_target, W, b, beta):
    v = jnp.concatenate([x, h_t], axis=1)
    pre = v @ W + b
    H = h_t.shape[1]
    s = jax.nn.sigmoid
    inpt, forget, output = s(pre[:, :H]), s(pre[:, H:2*H]), s(pre[:, 2*H:3*H])
    input_target, forget_target = s(pre[:, 3*H:4*H]), s(pre[:, 4*H:5*H])
    z_i = jnp.tanh(pre[:, 5*H:6*H])
    bx = beta * pre[:, 6*H:7*H]
    decay = (jnp.maximum(bx, 0.0) + jnp.log1p(jnp.exp(-jnp.abs(bx)))) / beta
    c_i = forget * c_t + inpt * z_i
    c_tgt = forget_target * c_target + input_target * z_i
    return c_i, c_tgt, output, decay


if __name__ == "__main__":
    key = jax.random.PRNGKey(0)
    softrelu_scale = 5.0  # stands in for args.softrelu_scale

    def make_case(k, batch, input_dim, hidden):
        D = input_dim + hidden
        ks = jax.random.split(k, 6)
        x = jax.random.normal(ks[0], (batch, input_dim), jnp.float32)
        h_t = jax.random.normal(ks[1], (batch, hidden), jnp.float32)
        c_t = jax.random.normal(ks[2], (batch, hidden), jnp.float32)
        c_target = jax.random.normal(ks[3], (batch, hidden), jnp.float32)
        bound = 1.0 / jnp.sqrt(jnp.float32(D))
        W = jax.random.uniform(ks[4], (D, 7 * hidden), minval=-bound,
                               maxval=bound, dtype=jnp.float32)
        b = jax.random.uniform(ks[5], (7 * hidden,), minval=-bound,
                               maxval=bound, dtype=jnp.float32)
        return x, h_t, c_t, c_target, W, b

    cell = jax.jit(hawkes_lstm_cell,
                   static_argnames=("softrelu_scale", "batch_tile"))

    k1, k2 = jax.random.split(key)
    # Case 1: tiny batch -> gridless single-block path.
    # Case 2: B=300     -> 2 balanced "parallel" batch tiles (TB=152, masked edge).
    cases = ((k1, (4, 32, 32)), (k2, (300, 32, 32)))

    for k, (batch, input_dim, hidden) in cases:
        x, h_t, c_t, c_target, W, b = make_case(k, batch, input_dim, hidden)
        # Pack ONCE at parameter-load time (outside the per-step cell call).
        packed = pack_params(W, b, input_dim, hidden,
                             softrelu_scale=softrelu_scale)

        outs = cell(x, h_t, c_t, c_target, packed,
                    softrelu_scale=softrelu_scale)
        outs = jax.block_until_ready(outs)

        refs = _reference(x, h_t, c_t, c_target, W, b, softrelu_scale)
        for o, r in zip(outs, refs):
            assert o.shape == (batch, hidden)
            # bf16 matmul operands (f32 accumulation) => loosened tolerance
            # vs the pure-f32 reference.
            assert jnp.allclose(o, r, atol=3e-2, rtol=3e-2), \
                "mismatch vs reference"

    print("KERNEL_OK")
</pallas_src>

<mosaic_0001>
module attributes {stable_mosaic.version = 11 : i64} {
  func.func @_hawkes_cell_kernel(%arg0: memref<8x32xf32, #tpu.memory_space<vmem>>, %arg1: memref<8x32xf32, #tpu.memory_space<vmem>>, %arg2: memref<8x32xf32, #tpu.memory_space<vmem>>, %arg3: memref<8x32xf32, #tpu.memory_space<vmem>>, %arg4: memref<32x896xbf16, #tpu.memory_space<vmem>>, %arg5: memref<32x896xbf16, #tpu.memory_space<vmem>>, %arg6: memref<1x896xf32, #tpu.memory_space<vmem>>, %arg7: memref<8x32xf32, #tpu.memory_space<vmem>>, %arg8: memref<8x32xf32, #tpu.memory_space<vmem>>, %arg9: memref<8x32xf32, #tpu.memory_space<vmem>>, %arg10: memref<8x32xf32, #tpu.memory_space<vmem>>) attributes {dimension_semantics = [], scalar_prefetch = 0 : i64, scratch_operands = 0 : i64, tpu.core_type = #tpu.core_type<tc>} {
    %c0 = arith.constant 0 : index
    %c0_0 = arith.constant 0 : index
    %0 = vector.load %arg0[%c0, %c0_0] : memref<8x32xf32, #tpu.memory_space<vmem>>, vector<8x32xf32>
    %1 = arith.truncf %0 : vector<8x32xf32> to vector<8x32xbf16>
    %c0_1 = arith.constant 0 : index
    %c0_2 = arith.constant 0 : index
    %2 = vector.load %arg4[%c0_1, %c0_2] : memref<32x896xbf16, #tpu.memory_space<vmem>>, vector<32x896xbf16>
    %cst = arith.constant dense<0.000000e+00> : vector<8x896xf32>
    %3 = tpu.matmul %1, %2, %cst {dimension_numbers = #tpu.dot_dimension_numbers<[1], [0], [0], [1], [0, 0, 1, 1], [], []>} : vector<8x32xbf16>, vector<32x896xbf16>, vector<8x896xf32> -> vector<8x896xf32>
    %c0_3 = arith.constant 0 : index
    %c0_4 = arith.constant 0 : index
    %4 = vector.load %arg1[%c0_3, %c0_4] : memref<8x32xf32, #tpu.memory_space<vmem>>, vector<8x32xf32>
    %5 = arith.truncf %4 : vector<8x32xf32> to vector<8x32xbf16>
    %c0_5 = arith.constant 0 : index
    %c0_6 = arith.constant 0 : index
    %6 = vector.load %arg5[%c0_5, %c0_6] : memref<32x896xbf16, #tpu.memory_space<vmem>>, vector<32x896xbf16>
    %cst_7 = arith.constant dense<0.000000e+00> : vector<8x896xf32>
    %7 = tpu.matmul %5, %6, %cst_7 {dimension_numbers = #tpu.dot_dimension_numbers<[1], [0], [0], [1], [0, 0, 1, 1], [], []>} : vector<8x32xbf16>, vector<32x896xbf16>, vector<8x896xf32> -> vector<8x896xf32>
    %8 = arith.addf %3, %7 : vector<8x896xf32>
    %c0_8 = arith.constant 0 : index
    %c0_9 = arith.constant 0 : index
    %9 = vector.load %arg6[%c0_8, %c0_9] : memref<1x896xf32, #tpu.memory_space<vmem>>, vector<1x896xf32>
    %10 = vector.broadcast %9 : vector<1x896xf32> to vector<8x896xf32>
    %11 = arith.addf %8, %10 : vector<8x896xf32>
    %12 = vector.extract_strided_slice %11 {offsets = [0, 0], sizes = [8, 32], strides = [1, 1]} : vector<8x896xf32> to vector<8x32xf32>
    %cst_10 = arith.constant 5.000000e-01 : f32
    %13 = vector.broadcast %cst_10 : f32 to vector<8x32xf32>
    %14 = arith.mulf %13, %12 : vector<8x32xf32>
    %15 = math.tanh %14 : vector<8x32xf32>
    %cst_11 = arith.constant 5.000000e-01 : f32
    %16 = vector.broadcast %cst_11 : f32 to vector<8x32xf32>
    %17 = arith.mulf %16, %15 : vector<8x32xf32>
    %cst_12 = arith.constant 5.000000e-01 : f32
    %18 = vector.broadcast %cst_12 : f32 to vector<8x32xf32>
    %19 = arith.addf %17, %18 : vector<8x32xf32>
    %20 = vector.extract_strided_slice %11 {offsets = [0, 128], sizes = [8, 32], strides = [1, 1]} : vector<8x896xf32> to vector<8x32xf32>
    %cst_13 = arith.constant 5.000000e-01 : f32
    %21 = vector.broadcast %cst_13 : f32 to vector<8x32xf32>
    %22 = arith.mulf %21, %20 : vector<8x32xf32>
    %23 = math.tanh %22 : vector<8x32xf32>
    %cst_14 = arith.constant 5.000000e-01 : f32
    %24 = vector.broadcast %cst_14 : f32 to vector<8x32xf32>
    %25 = arith.mulf %24, %23 : vector<8x32xf32>
    %cst_15 = arith.constant 5.000000e-01 : f32
    %26 = vector.broadcast %cst_15 : f32 to vector<8x32xf32>
    %27 = arith.addf %25, %26 : vector<8x32xf32>
    %28 = vector.extract_strided_slice %11 {offsets = [0, 256], sizes = [8, 32], strides = [1, 1]} : vector<8x896xf32> to vector<8x32xf32>
    %cst_16 = arith.constant 5.000000e-01 : f32
    %29 = vector.broadcast %cst_16 : f32 to vector<8x32xf32>
    %30 = arith.mulf %29, %28 : vector<8x32xf32>
    %31 = math.tanh %30 : vector<8x32xf32>
    %cst_17 = arith.constant 5.000000e-01 : f32
    %32 = vector.broadcast %cst_17 : f32 to vector<8x32xf32>
    %33 = arith.mulf %32, %31 : vector<8x32xf32>
    %cst_18 = arith.constant 5.000000e-01 : f32
    %34 = vector.broadcast %cst_18 : f32 to vector<8x32xf32>
    %35 = arith.addf %33, %34 : vector<8x32xf32>
    %36 = vector.extract_strided_slice %11 {offsets = [0, 384], sizes = [8, 32], strides = [1, 1]} : vector<8x896xf32> to vector<8x32xf32>
    %cst_19 = arith.constant 5.000000e-01 : f32
    %37 = vector.broadcast %cst_19 : f32 to vector<8x32xf32>
    %38 = arith.mulf %37, %36 : vector<8x32xf32>
    %39 = math.tanh %38 : vector<8x32xf32>
    %cst_20 = arith.constant 5.000000e-01 : f32
    %40 = vector.broadcast %cst_20 : f32 to vector<8x32xf32>
    %41 = arith.mulf %40, %39 : vector<8x32xf32>
    %cst_21 = arith.constant 5.000000e-01 : f32
    %42 = vector.broadcast %cst_21 : f32 to vector<8x32xf32>
    %43 = arith.addf %41, %42 : vector<8x32xf32>
    %44 = vector.extract_strided_slice %11 {offsets = [0, 512], sizes = [8, 32], strides = [1, 1]} : vector<8x896xf32> to vector<8x32xf32>
    %cst_22 = arith.constant 5.000000e-01 : f32
    %45 = vector.broadcast %cst_22 : f32 to vector<8x32xf32>
    %46 = arith.mulf %45, %44 : vector<8x32xf32>
    %47 = math.tanh %46 : vector<8x32xf32>
    %cst_23 = arith.constant 5.000000e-01 : f32
    %48 = vector.broadcast %cst_23 : f32 to vector<8x32xf32>
    %49 = arith.mulf %48, %47 : vector<8x32xf32>
    %cst_24 = arith.constant 5.000000e-01 : f32
    %50 = vector.broadcast %cst_24 : f32 to vector<8x32xf32>
    %51 = arith.addf %49, %50 : vector<8x32xf32>
    %52 = vector.extract_strided_slice %11 {offsets = [0, 640], sizes = [8, 32], strides = [1, 1]} : vector<8x896xf32> to vector<8x32xf32>
    %53 = math.tanh %52 : vector<8x32xf32>
    %54 = vector.extract_strided_slice %11 {offsets = [0, 768], sizes = [8, 32], strides = [1, 1]} : vector<8x896xf32> to vector<8x32xf32>
    %cst_25 = arith.constant 0.000000e+00 : f32
    %55 = vector.broadcast %cst_25 : f32 to vector<8x32xf32>
    %56 = arith.maximumf %54, %55 : vector<8x32xf32>
    %57 = math.absf %54 : vector<8x32xf32>
    %cst_26 = arith.constant 0.000000e+00 : f32
    %58 = vector.broadcast %cst_26 : f32 to vector<8x32xf32>
    %59 = arith.subf %58, %57 : vector<8x32xf32>
    %60 = math.exp %59 : vector<8x32xf32>
    %61 = math.log1p %60 : vector<8x32xf32>
    %62 = arith.addf %56, %61 : vector<8x32xf32>
    %cst_27 = arith.constant 2.000000e-01 : f32
    %63 = vector.broadcast %cst_27 : f32 to vector<8x32xf32>
    %64 = arith.mulf %62, %63 : vector<8x32xf32>
    %c0_28 = arith.constant 0 : index
    %c0_29 = arith.constant 0 : index
    %65 = vector.load %arg2[%c0_28, %c0_29] : memref<8x32xf32, #tpu.memory_space<vmem>>, vector<8x32xf32>
    %66 = arith.mulf %27, %65 : vector<8x32xf32>
    %67 = arith.mulf %19, %53 : vector<8x32xf32>
    %68 = arith.addf %66, %67 : vector<8x32xf32>
    %c0_30 = arith.constant 0 : index
    %c0_31 = arith.constant 0 : index
    %69 = vector.load %arg7[%c0_30, %c0_31] : memref<8x32xf32, #tpu.memory_space<vmem>>, vector<8x32xf32>
    tpu.vector_store %arg7[%c0_30, %c0_31], %68 {strides = array<i32>} : memref<8x32xf32, #tpu.memory_space<vmem>>, vector<8x32xf32>,
    %c0_32 = arith.constant 0 : index
    %c0_33 = arith.constant 0 : index
    %70 = vector.load %arg3[%c0_32, %c0_33] : memref<8x32xf32, #tpu.memory_space<vmem>>, vector<8x32xf32>
    %71 = arith.mulf %51, %70 : vector<8x32xf32>
    %72 = arith.mulf %43, %53 : vector<8x32xf32>
    %73 = arith.addf %71, %72 : vector<8x32xf32>
    %c0_34 = arith.constant 0 : index
    %c0_35 = arith.constant 0 : index
    %74 = vector.load %arg8[%c0_34, %c0_35] : memref<8x32xf32, #tpu.memory_space<vmem>>, vector<8x32xf32>
    tpu.vector_store %arg8[%c0_34, %c0_35], %73 {strides = array<i32>} : memref<8x32xf32, #tpu.memory_space<vmem>>, vector<8x32xf32>,
    %c0_36 = arith.constant 0 : index
    %c0_37 = arith.constant 0 : index
    %75 = vector.load %arg9[%c0_36, %c0_37] : memref<8x32xf32, #tpu.memory_space<vmem>>, vector<8x32xf32>
    tpu.vector_store %arg9[%c0_36, %c0_37], %35 {strides = array<i32>} : memref<8x32xf32, #tpu.memory_space<vmem>>, vector<8x32xf32>,
    %c0_38 = arith.constant 0 : index
    %c0_39 = arith.constant 0 : index
    %76 = vector.load %arg10[%c0_38, %c0_39] : memref<8x32xf32, #tpu.memory_space<vmem>>, vector<8x32xf32>
    tpu.vector_store %arg10[%c0_38, %c0_39], %64 {strides = array<i32>} : memref<8x32xf32, #tpu.memory_space<vmem>>, vector<8x32xf32>,
    return
  }
}

</mosaic_0001>

<bundles_post_ra>
// kernel: hawkes_lstm_cell.1
= control target key start
LH: loop header
LB: loop body
LE: loop exit
PB: predicated region body
PF: predicated region fallthrough
CT: control target
= control target key end

     0   :  { %16 = vsyncpa [#allocation3], 0  ;;  %s985_s0 = inlined_call_operand.vmem [shape: f32[8,32], index: 0, kind: input, shape index: {}]   ;;  %s986_s1 = inlined_call_operand.vmem [shape: f32[8,32], index: 1, kind: input, shape index: {}]   ;;  %s987_s2 = inlined_call_operand.vmem [shape: f32[8,32], index: 2, kind: input, shape index: {}]   ;;  %s988_s3 = inlined_call_operand.vmem [shape: f32[8,32], index: 3, kind: input, shape index: {}]   ;;  %s989_s4 = inlined_call_operand.hbm [shape: bf16[32,896], index: 4, kind: input, shape index: {}]   ;;  %s990_s5 = inlined_call_operand.hbm [shape: bf16[32,896], index: 5, kind: input, shape index: {}]   ;;  %s991_s6 = inlined_call_operand.vmem [shape: f32[1,896], index: 6, kind: input, shape index: {}]   ;;  %s992_s7 = inlined_call_operand.vmem [shape: f32[8,32], index: 7, kind: output, shape index: {0}]   ;;  %s993_s8 = inlined_call_operand.vmem [shape: f32[8,32], index: 8, kind: output, shape index: {1}]   ;;  %s994_s9 = inlined_call_operand.vmem [shape: f32[8,32], index: 9, kind: output, shape index: {2}]   ;;  %s995_s10 = inlined_call_operand.vmem [shape: f32[8,32], index: 10, kind: output, shape index: {3}]  }
   0x1   :  { %17 = vsyncpa [#allocation5], 0  ;;  %s852_s13 = smov [#allocation2]   ;;  %s804_s17 = scalar_lea.hbm %s989_s4, 1792 }
   0x2   :  { %s31_s14 = sshll.u32 %s852_s13, 4  ;;  %p805_p0 = scmp.ne.s32.totalorder %s989_s4, %s804_s17  ;;  %s32_s14 = int_to_ptr.vmem [resolvable:$true] %s31_s14 }
   0x3   :  { %p808_p1 = scmp.lt.u32.totalorder %s804_s17, %s989_s4 }
   0x5   :  { %p810_p2 = pnand %p808_p1, %p805_p0 }
   0x7   :  { %813 = shalt.err (!%p810_p2)
}
   0x8   :  { %s814_s22 = scalar_lea.vmem %s32_s14, 1792  ;;  %p819_p4 = scmp.lt.s32.totalorder %s32_s14, %s32_s14 }
   0x9   :  { %p815_p3 = scmp.ne.s32.totalorder %s32_s14, %s814_s22  ;;  %p820_p5 = scmp.lt.s32.totalorder %s814_s22, %s814_s22 }
   0xb   :  { %p821_p6 = por %p820_p5, %p819_p4 }
   0xd   :  { %p822_p7 = pnand %p821_p6, %p815_p3 }
   0xf   :  { %825 = shalt.err (!%p822_p7)
}
  0x10   :  { %s853_s23 = smov 448   ;;  %s854_s24 = smov 28  }
  0x11   :  { %37 = dma.hbm_to_vmem [thread:$0]  %s989_s4, 1792, %s32_s14, [#allocation3], %s853_s23, %s853_s23, %s854_s24  }
  0x12   :  { %s855_s27 = smov [#allocation4]   ;;  %s826_s11 = scalar_lea.hbm %s990_s5, 1792 }
  0x13   :  { %s43_s28 = sshll.u32 %s855_s27, 4  ;;  %p827_p8 = scmp.ne.s32.totalorder %s990_s5, %s826_s11  ;;  %s44_s28 = int_to_ptr.vmem [resolvable:$true] %s43_s28 }
  0x14   :  { %p830_p9 = scmp.lt.u32.totalorder %s826_s11, %s990_s5 }
  0x16   :  { %p832_p10 = pnand %p830_p9, %p827_p8 }
  0x18   :  { %835 = shalt.err (!%p832_p10)
}
  0x19   :  { %s836_s17 = scalar_lea.vmem %s44_s28, 1792  ;;  %p841_p12 = scmp.lt.s32.totalorder %s44_s28, %s44_s28 }
  0x1a   :  { %p837_p11 = scmp.ne.s32.totalorder %s44_s28, %s836_s17  ;;  %p842_p13 = scmp.lt.s32.totalorder %s836_s17, %s836_s17 }
  0x1c   :  { %p843_p0 = por %p842_p13, %p841_p12 }
  0x1e   :  { %p844_p1 = pnand %p843_p0, %p837_p11 }
  0x20   :  { %847 = shalt.err (!%p844_p1)
}
  0x21   :  { %49 = dma.hbm_to_vmem [thread:$0]  %s990_s5, 1792, %s44_s28, [#allocation5], %s853_s23, %s853_s23, %s854_s24  }
  0x22   :  { %848 = dma.done.wait [#allocation3], 1792  }
  0x23   :  { %849 = vsyncadd [#allocation3], 4294965504 }
  0x24   :  { %850 = dma.done.wait [#allocation5], 1792  }
  0x25   :  { %851 = vsyncadd [#allocation5], 4294965504  ;;  %v856_v0 = vmov 0   ;;  %v748_v1 = vld [vmem:[#allocation4 + $0x4] ss:$28 sps:$4 sm:$0xff]   ;;  %v77_v9 = vld [vmem:[%s986_s1] sm:$0xff]  ;;  %v574_v42 = vlaneseq }
  0x26   :  { %203 = vmatprep.mubr.bf16.mxu0 %v856_v0  ;;  %244 = vmatprep.mubr.bf16.mxu1 %v856_v0  ;;  %v750_v2 = vld [vmem:[#allocation4 + $0xc] ss:$28 sps:$4 sm:$0xff]   ;;  %v752_v3 = vld [vmem:[#allocation4] ss:$28 sps:$4 sm:$0xff]   ;;  %v758_v7 = vld [vmem:[#allocation4 + $0x38] ss:$28 sps:$4 sm:$0xff]   ;;  %v78_v11 = vpack.c.bf16 %v77_v9, %v77_v9 }
  0x27   :  { %171 = vmatprep.subr.bf16.mxu0 %v748_v1  ;;  %v753_v4 = vld [vmem:[#allocation4 + $0x8] ss:$28 sps:$4 sm:$0xff]   ;;  %212 = vmatprep.subr.bf16.mxu1 %v750_v2  ;;  %v754_v5 = vld [vmem:[#allocation4 + $0x3c] ss:$28 sps:$4 sm:$0xff]   ;;  %v762_v10 = vld [vmem:[#allocation4 + $0x14] ss:$28 sps:$4 sm:$0xff]  }
  0x28   :  { %172 = vmatpush1.bf16.msra.mxu0 %v752_v3  ;;  %213 = vmatpush1.bf16.msra.mxu1 %v753_v4  ;;  %v756_v6 = vld [vmem:[#allocation4 + $0x44] ss:$28 sps:$4 sm:$0xff]   ;;  %v760_v12 = vld [vmem:[#allocation4 + $0x10] ss:$28 sps:$4 sm:$0xff]   ;;  %vm167_vm0 = vcmask 261120   ;;  %v857_v14 = vmov 0.0  }
  0x29   :  { %173 = vmatprep.subr.bf16.mxu0 %v754_v5  ;;  %v759_v8 = vld [vmem:[#allocation4 + $0x40] ss:$28 sps:$4 sm:$0xff]   ;;  %214 = vmatprep.subr.bf16.mxu1 %v756_v6  ;;  %v763_v13 = vld [vmem:[#allocation4 + $0x18] ss:$28 sps:$4 sm:$0xff]   ;;  %v766_v15 = vld [vmem:[#allocation4 + $0x4c] ss:$28 sps:$4 sm:$0xff]  }
  0x2a   :  { %v764_v16 = vld [vmem:[#allocation4 + $0x48] ss:$28 sps:$4 sm:$0xff]   ;;  %v767_v17 = vld [vmem:[#allocation4 + $0x50] ss:$28 sps:$4 sm:$0xff]   ;;  %v773_v19 = vld [vmem:[#allocation2 + $0xc] ss:$28 sps:$4 sm:$0xff]  }
  0x2b   :  { %v770_v18 = vld [vmem:[#allocation2 + $0x4] ss:$28 sps:$4 sm:$0xff]   ;;  %vm858_vm1 = vmmov 0   ;;  %v776_v22 = vld [vmem:[#allocation2 + $0x3c] ss:$28 sps:$4 sm:$0xff]   ;;  %v575_v43 = vshrl.u32 %v574_v42, 7 }
  0x2c   :  { %174 = vmatpush1.bf16.msra.mxu0 %v758_v7  ;;  %215 = vmatpush1.bf16.msra.mxu1 %v759_v8  ;;  %v768_v20 = vld [vmem:[#allocation2] ss:$28 sps:$4 sm:$0xff]   ;;  %v771_v21 = vld [vmem:[#allocation2 + $0x8] ss:$28 sps:$4 sm:$0xff]   ;;  %v774_v24 = vld [vmem:[#allocation2 + $0x38] ss:$28 sps:$4 sm:$0xff]  }
  0x2d   :  { %253 = vmatprep.subr.bf16.mxu0 %v762_v10  ;;  %725 = vmatprep.subr.bf16.mxu1 %v857_v14  ;;  %v779_v23 = vld [vmem:[#allocation2 + $0x44] ss:$28 sps:$4 sm:$0xff]   ;;  %v782_v27 = vld [vmem:[#allocation2 + $0x14] ss:$28 sps:$4 sm:$0xff]   ;;  %v786_v31 = vld [vmem:[#allocation2 + $0x4c] ss:$28 sps:$4 sm:$0xff]  }
  0x2e   :  { %v777_v25 = vld [vmem:[#allocation2 + $0x40] ss:$28 sps:$4 sm:$0xff]   ;;  %v780_v29 = vld [vmem:[#allocation2 + $0x10] ss:$28 sps:$4 sm:$0xff]   ;;  %v783_v30 = vld [vmem:[#allocation2 + $0x18] ss:$28 sps:$4 sm:$0xff]  }
  0x2f   :  { %697 = vmatmul.mubr.msk.bf16.vlgmr.msra.gmra.mrb[0].mxu0 %vm167_vm0, %v78_v11  ;;  %698 = vmatmul.mubr.msk.bf16.vlgmr.msra.gmra.mrb[0].mxu1 %vm167_vm0, %v78_v11  ;;  %v59_v26 = vld [vmem:[%s985_s0] sm:$0xff]  ;;  %v787_v33 = vld [vmem:[#allocation2 + $0x50] ss:$28 sps:$4 sm:$0xff]   ;;  %v576_v52 = vsub.s32 0, %v575_v43  ;;  %v584_v53 = vsub.s32 2, %v575_v43  ;;  %v580_v55 = vsub.s32 1, %v575_v43 }
  0x30   :  { %254 = vmatpush1.bf16.msra.mxu0 %v760_v12  ;;  %726 = vmatpush3.bf16.msra.mxu1 %v763_v13  ;;  %v60_v28 = vpack.c.bf16 %v59_v26, %v59_v26  ;;  %v784_v32 = vld [vmem:[#allocation2 + $0x48] ss:$28 sps:$4 sm:$0xff]   ;;  %v588_v56 = vsub.s32 3, %v575_v43  ;;  %v600_v12 = vsub.s32 6, %v575_v43 }
  0x31   :  { %255 = vmatprep.subr.bf16.mxu0 %v766_v15  ;;  %727 = vmatprep.subr.bf16.mxu1 %v857_v14  ;;  %v572_v54 = vld [vmem:[%s991_s6] sm:$0xff]  ;;  %v596_v15 = vsub.s32 5, %v575_v43 }
  0x32   :  { %285 = vmatprep.mubr.bf16.mxu0 %v856_v0  ;;  %729 = vmatprep.mubr.msk.bf16.mxu1 %vm858_vm1, %v857_v14  ;;  %v577_v57 = vrot.slane %v572_v54, %v576_v52  ;;  %v585_v58 = vrot.slane %v572_v54, %v584_v53  ;;  %v581_v61 = vrot.slane %v572_v54, %v580_v55 }
  0x33   :  { %v589_v62 = vrot.slane %v572_v54, %v588_v56 }
  0x34   :  { %256 = vmatpush1.bf16.msra.mxu0 %v764_v16  ;;  %728 = vmatpush3.bf16.msra.mxu1 %v767_v17 }
  0x35   :  { %409 = vmatprep.subr.bf16.mxu0 %v770_v18  ;;  %450 = vmatprep.subr.bf16.mxu1 %v773_v19 }
  0x37   :  { %699 = vmatmul.mubr.msk.bf16.vlgmr.msra.gmra.mrb[4].mxu0 %vm167_vm0, %v78_v11  ;;  %730 = vmatmul.mubr.msk.bf16.vlgmr.msra.gmra.mrb[4].mxu1 %vm167_vm0, %v78_v11  ;;  %v592_v11 = vsub.s32 4, %v575_v43 }
  0x38   :  { %410 = vmatpush1.bf16.msra.mxu0 %v768_v20  ;;  %451 = vmatpush1.bf16.msra.mxu1 %v771_v21  ;;  %v601_v21 = vrot.slane %v572_v54, %v600_v12 }
  0x39   :  { %411 = vmatprep.subr.bf16.mxu0 %v776_v22  ;;  %452 = vmatprep.subr.bf16.mxu1 %v779_v23  ;;  %v593_v20 = vrot.slane %v572_v54, %v592_v11 }
  0x3a   :  { %441 = vmatprep.mubr.bf16.mxu0 %v856_v0  ;;  %482 = vmatprep.mubr.bf16.mxu1 %v856_v0 }
  0x3c   :  { %412 = vmatpush1.bf16.msra.mxu0 %v774_v24  ;;  %453 = vmatpush1.bf16.msra.mxu1 %v777_v25  ;;  %v597_v24 = vrot.slane %v572_v54, %v596_v15 }
  0x3d   :  { %491 = vmatprep.subr.bf16.mxu0 %v782_v27  ;;  %733 = vmatprep.subr.bf16.mxu1 %v857_v14 }
  0x3f   :  { %715 = vmatmul.mubr.msk.bf16.vlgmr.msra.gmra.mrb[8].mxu0 %vm167_vm0, %v60_v28  ;;  %716 = vmatmul.mubr.msk.bf16.vlgmr.msra.gmra.mrb[8].mxu1 %vm167_vm0, %v60_v28 }
  0x40   :  { %492 = vmatpush1.bf16.msra.mxu0 %v780_v29  ;;  %734 = vmatpush3.bf16.msra.mxu1 %v783_v30 }
  0x41   :  { %493 = vmatprep.subr.bf16.mxu0 %v786_v31  ;;  %735 = vmatprep.subr.bf16.mxu1 %v857_v14 }
  0x42   :  { %523 = vmatprep.mubr.bf16.mxu0 %v856_v0  ;;  %737 = vmatprep.mubr.msk.bf16.mxu1 %vm858_vm1, %v857_v14 }
  0x44   :  { %494 = vmatpush1.bf16.msra.mxu0 %v784_v32  ;;  %736 = vmatpush3.bf16.msra.mxu1 %v787_v33 }
  0x47   :  { %717 = vmatmul.mubr.msk.bf16.vlgmr.msra.gmra.mrb[12].mxu0 %vm167_vm0, %v60_v28  ;;  %738 = vmatmul.mubr.msk.bf16.vlgmr.msra.gmra.mrb[12].mxu1 %vm167_vm0, %v60_v28 }
 0x102   :  { %v246_v34 = vpop.f32.mrb[0].mxu1  ;;  %v205_v35 = vpop.f32.mrb[0].mxu0 }
 0x103   :  { %v248_v36 = vpop.f32.mrb[1].mxu1  ;;  %v207_v37 = vpop.f32.mrb[1].mxu0 }
 0x104   :  { %v250_v38 = vpop.f32.mrb[2].mxu1  ;;  %v209_v39 = vpop.f32.mrb[2].mxu0 }
 0x105   :  { %v251_v40 = vpop.f32.mrb[3].mxu1  ;;  %v210_v41 = vpop.f32.mrb[3].mxu0 }
 0x10a   :  { %v328_v44 = vpop.f32.mrb[4].mxu1  ;;  %v287_v45 = vpop.f32.mrb[4].mxu0 }
 0x10b   :  { %v731_v46 = vpop.f32.mrb[5].mxu1  ;;  %v289_v47 = vpop.f32.mrb[5].mxu0 }
 0x10c   :  { %v331_v48 = vpop.f32.mrb[6].mxu1  ;;  %v291_v49 = vpop.f32.mrb[6].mxu0 }
 0x10d   :  { %v732_v50 = vpop.f32.mrb[7].mxu1  ;;  %v292_v51 = vpop.f32.mrb[7].mxu0 }
 0x10e   :  { %v653_v51 = vld [vmem:[%s987_s2] sm:$0xff] }
 0x112   :  { %v443_v59 = vpop.f32.mrb[8].mxu0  ;;  %v484_v60 = vpop.f32.mrb[8].mxu1 }
 0x113   :  { %v444_v63 = vadd.f32 %v443_v59, %v205_v35  ;;  %v485_v0 = vadd.f32 %v484_v60, %v246_v34  ;;  %v445_v1 = vpop.f32.mrb[9].mxu0  ;;  %v486_v2 = vpop.f32.mrb[9].mxu1  ;;  %v658_v60 = vld [vmem:[%s988_s3] sm:$0xff] }
 0x114   :  { %v446_v3 = vadd.f32 %v445_v1, %v207_v37  ;;  %v487_v4 = vadd.f32 %v486_v2, %v248_v36  ;;  %v488_v5 = vpop.f32.mrb[10].mxu1  ;;  %v447_v6 = vpop.f32.mrb[10].mxu0 }
 0x115   :  { %v609_v7 = vadd.f32 %v577_v57, %v444_v63  ;;  %v611_v8 = vadd.f32 %v585_v58, %v485_v0  ;;  %v489_v9 = vpop.f32.mrb[11].mxu1  ;;  %v448_v10 = vpop.f32.mrb[11].mxu0 }
 0x116   :  { %v610_v13 = vadd.f32 %v581_v61, %v446_v3  ;;  %v612_v14 = vadd.f32 %v589_v62, %v487_v4 }
 0x117   :  { %v616_v16 = vmul.f32 0.5, %v609_v7  ;;  %v624_v17 = vmul.f32 0.5, %v611_v8 }
 0x118   :  { %v620_v18 = vmul.f32 0.5, %v610_v13  ;;  %v628_v19 = vmul.f32 0.5, %v612_v14 }
 0x119   :  { %788 = vtanh.f32 %v616_v16 }
 0x11a   :  { %790 = vtanh.f32 %v624_v17  ;;  %v525_v22 = vpop.f32.mrb[12].mxu0  ;;  %v566_v23 = vpop.f32.mrb[12].mxu1 }
 0x11b   :  { %792 = vtanh.f32 %v620_v18  ;;  %v526_v25 = vadd.f32 %v525_v22, %v287_v45  ;;  %v567_v26 = vadd.f32 %v566_v23, %v328_v44  ;;  %v527_v27 = vpop.f32.mrb[13].mxu0  ;;  %v739_v28 = vpop.f32.mrb[13].mxu1 }
 0x11c   :  { %794 = vtanh.f32 %v628_v19  ;;  %v528_v29 = vadd.f32 %v527_v27, %v289_v47  ;;  %v569_v30 = vpop.f32.mrb[14].mxu1  ;;  %v529_v31 = vpop.f32.mrb[14].mxu0 }
 0x11d   :  { %v613_v32 = vadd.f32 %v593_v20, %v526_v25  ;;  %v615_v33 = vadd.f32 %v601_v21, %v567_v26  ;;  %v740_v34 = vpop.f32.mrb[15].mxu1  ;;  %v530_v35 = vpop.f32.mrb[15].mxu0 }
 0x11e   :  { %v614_v36 = vadd.f32 %v597_v24, %v528_v29 }
 0x11f   :  { %v632_v37 = vmul.f32 0.5, %v613_v32  ;;  %v638_v38 = vand.u32 2147483647, %v615_v33  ;;  %v637_v9 = vmax.f32 %v615_v33, 0.0 }
 0x120   :  { %796 = vtanh.f32 %v614_v36 }
 0x121   :  { %798 = vtanh.f32 %v632_v37  ;;  %v639_v39 = vsub.f32 0.0, %v638_v38 }
 0x123   :  { %v789_v40 = vpop.eup %788  ;;  %v640_v41 = vmul.f32 1.442695, %v639_v39 }
 0x124   :  { %v791_v42 = vpop.eup %790  ;;  %v618_v44 = vmul.f32 0.5, %v789_v40 }
 0x125   :  { %v793_v43 = vpop.eup %792  ;;  %v626_v45 = vmul.f32 0.5, %v791_v42  ;;  %800 = vpow2.f32 %v640_v41 }
 0x126   :  { %v795_v46 = vpop.eup %794  ;;  %v622_v47 = vmul.f32 0.5, %v793_v43  ;;  %v619_v52 = vadd.f32 0.5, %v618_v44 }
 0x127   :  { %v627_v48 = vadd.f32 0.5, %v626_v45  ;;  %v630_v49 = vmul.f32 0.5, %v795_v46 }
 0x128   :  { %v623_v50 = vadd.f32 0.5, %v622_v47 }
 0x129   :  { %663 = vst.msk [vmem:[%s994_s9] sm:$0xff] %vm167_vm0, %v627_v48  ;;  %v631_v53 = vadd.f32 0.5, %v630_v49 }
 0x12a   :  { %v797_v54 = vpop.eup %796  ;;  %v654_v56 = vmul.f32 %v653_v51, %v623_v50 }
 0x12b   :  { %v799_v55 = vpop.eup %798  ;;  %v655_v57 = vmul.f32 %v797_v54, %v619_v52  ;;  %v660_v58 = vmul.f32 %v797_v54, %v631_v53 }
 0x12c   :  { %v634_v59 = vmul.f32 0.5, %v799_v55 }
 0x12d   :  { %v656_v61 = vadd.f32 %v655_v57, %v654_v56 }
 0x12e   :  { %v635_v62 = vadd.f32 0.5, %v634_v59 }
 0x12f   :  { %v801_v63 = vpop.eup %800  ;;  %657 = vst.msk [vmem:[%s992_s7] sm:$0xff] %vm167_vm0, %v656_v61 }
 0x130   :  { %v659_v0 = vmul.f32 %v658_v60, %v635_v62  ;;  %v642_v1 = vadd.f32 1.0, %v801_v63  ;;  %v645_v3 = vmul.f32 -0.5, %v801_v63  ;;  %v648_v5 = vand.u32 2147483647, %v801_v63 }
 0x132   :  { %802 = vlog2.f32 %v642_v1  ;;  %v661_v2 = vadd.f32 %v660_v58, %v659_v0  ;;  %v646_v4 = vadd.f32 1.0, %v645_v3  ;;  %vm649_vm2 = vcmp.lt.f32.partialorder %v648_v5, 0.0004427343 }
 0x134   :  { %662 = vst.msk [vmem:[%s993_s8] sm:$0xff] %vm167_vm0, %v661_v2  ;;  %v647_v8 = vmul.f32 %v801_v63, %v646_v4 }
 0x13c   :  { %v803_v6 = vpop.eup %802 }
 0x13d   :  { %v644_v7 = vmul.f32 0.6931472, %v803_v6 }
 0x13f   :  { %v650_v10 = vsel %vm649_vm2, %v647_v8, %v644_v7 }
 0x140   :  { %v651_v11 = vadd.f32 %v650_v10, %v637_v9 }
 0x142   :  { %v652_v12 = vmul.f32 0.2, %v651_v11 }
 0x144   :  { %664 = vst.msk [vmem:[%s995_s10] sm:$0xff] %vm167_vm0, %v652_v12 }
 0x145   :  { %681 = vsyncpa [#allocation3], 1 }
 0x146   :  { %682 = vsyncpa [#allocation5], 1 }

</bundles_post_ra>
